<compile_context>
chip_gen: v7x
topology: tpu7x:2x2x1
jax: 0.10.0
libtpu: 0.0.40
codegen_flags: <defaults>
</compile_context>

<pallas_src>
import math
import functools

import jax
import jax.numpy as jnp
from jax.experimental import pallas as pl
from jax.experimental.pallas import tpu as pltpu


def _mhsa_kernel(x_ref, wq_ref, wk_ref, wv_ref, bq_ref, bk_ref, bv_ref,
                 wo_ref, bo_ref, o_ref, *, num_heads, d_kh, d_vh):
    """One batch-block.

    x_ref : (Bb, S, d_in)        bf16
    wq/wk : (d_in, H*d_kh)       bf16 (fused heads)
    wv    : (d_in, H*d_vh)       bf16
    bq/bk : (1, H*d_kh)          f32
    bv    : (1, H*d_vh)          f32
    wo    : (H, d_vh, d_v_pad)   bf16 (output proj, lane-padded)
    bo    : (1, d_v_pad)         f32
    o_ref : (Bb, S, d_v_pad)     f32
    """
    Bb, S, d_in = x_ref.shape
    d_v_p = o_ref.shape[-1]
    scale = 1.0 / math.sqrt(d_kh)

    # Merge leading dims (free, row-major) so projections are plain 2-D matmuls.
    x2 = x_ref[...].reshape(Bb * S, d_in)

    # Fused Q/K/V projections: one full-width MXU matmul each, f32 accumulate.
    q = (jnp.dot(x2, wq_ref[...], preferred_element_type=jnp.float32)
         + bq_ref[...]) * scale                      # scale folded into Q
    k = jnp.dot(x2, wk_ref[...], preferred_element_type=jnp.float32) + bk_ref[...]
    v = jnp.dot(x2, wv_ref[...], preferred_element_type=jnp.float32) + bv_ref[...]

    qb = q.astype(jnp.bfloat16)
    kb = k.astype(jnp.bfloat16)
    vb = v.astype(jnp.bfloat16)

    acc = jnp.zeros((Bb * S, d_v_p), jnp.float32)
    for h in range(num_heads):                       # static unroll over heads
        qh = qb[:, h * d_kh:(h + 1) * d_kh].reshape(Bb, S, d_kh)
        kh = kb[:, h * d_kh:(h + 1) * d_kh].reshape(Bb, S, d_kh)
        vh = vb[:, h * d_vh:(h + 1) * d_vh].reshape(Bb, S, d_vh)

        # Scores without materializing k.T (contract last dims directly).
        s = jnp.einsum("bqd,bkd->bqk", qh, kh,
                       preferred_element_type=jnp.float32)       # (Bb,S,S) f32
        s_max = jnp.max(s, axis=-1, keepdims=True)
        p = jnp.exp(s - s_max)
        p = p * pl.reciprocal(jnp.sum(p, axis=-1, keepdims=True), approx=True)

        att = jnp.einsum("bqk,bkd->bqd", p.astype(jnp.bfloat16), vh,
                         preferred_element_type=jnp.float32)     # (Bb,S,d_vh)

        # Head "concat" + output projection fused:
        #   concat_h(att_h) @ Wo  ==  sum_h att_h @ Wo[h*d_vh:(h+1)*d_vh, :]
        acc = acc + jnp.dot(att.reshape(Bb * S, d_vh).astype(jnp.bfloat16),
                            wo_ref[h], preferred_element_type=jnp.float32)

    o_ref[...] = (acc + bo_ref[...]).reshape(Bb, S, d_v_p)


def multi_head_self_attention(x, params, *, num_heads):
    """x: (B, S, d_in) float32. Returns (B, S, d_v) float32."""
    B, S, d_in = x.shape
    wq, bq, wk, bk, wv, bv, wo, bo = params
    H, _, d_kh = wq.shape
    d_vh = wv.shape[-1]
    d_k = H * d_kh
    d_v = wo.shape[0]
    assert H == num_heads

    f32, bf16 = jnp.float32, jnp.bfloat16

    # --- one-time wrapper-side layout prep --------------------------------
    # Fuse per-head projection weights into full-width (d_in, d_k/d_v) mats.
    wq_f = jnp.transpose(wq, (1, 0, 2)).reshape(d_in, d_k).astype(bf16)
    wk_f = jnp.transpose(wk, (1, 0, 2)).reshape(d_in, d_k).astype(bf16)
    wv_f = jnp.transpose(wv, (1, 0, 2)).reshape(d_in, H * d_vh).astype(bf16)
    bq_f = bq.reshape(1, d_k).astype(f32)
    bk_f = bk.reshape(1, d_k).astype(f32)
    bv_f = bv.reshape(1, H * d_vh).astype(f32)

    # Lane-dense output: pad output-projection columns to a multiple of 128.
    d_v_p = ((d_v + 127) // 128) * 128
    wo_r = jnp.pad(wo.reshape(H, d_vh, d_v),
                   ((0, 0), (0, 0), (0, d_v_p - d_v))).astype(bf16)
    bo_p = jnp.pad(bo.reshape(1, d_v), ((0, 0), (0, d_v_p - d_v))).astype(f32)

    x_bf = x.astype(bf16)

    # Batch blocking: keep an even "parallel" grid (2 TensorCores on v7x) while
    # packing several batch rows per step when B allows it.
    block_b = B // 2 if (B >= 2 and B % 2 == 0) else 1
    grid_b = B // block_b

    kernel = functools.partial(_mhsa_kernel, num_heads=H, d_kh=d_kh, d_vh=d_vh)
    full = lambda shp: pl.BlockSpec(shp, lambda b: (0,) * len(shp))

    out_p = pl.pallas_call(
        kernel,
        out_shape=jax.ShapeDtypeStruct((B, S, d_v_p), f32),
        grid_spec=pltpu.PrefetchScalarGridSpec(
            num_scalar_prefetch=0,
            grid=(grid_b,),
            in_specs=[
                pl.BlockSpec((block_b, S, d_in), lambda b: (b, 0, 0)),     # x
                full((d_in, d_k)), full((d_in, d_k)), full((d_in, H * d_vh)),
                full((1, d_k)), full((1, d_k)), full((1, H * d_vh)),
                full((H, d_vh, d_v_p)), full((1, d_v_p)),
            ],
            out_specs=pl.BlockSpec((block_b, S, d_v_p), lambda b: (b, 0, 0)),
        ),
        compiler_params=pltpu.CompilerParams(
            dimension_semantics=("parallel",)),
    )(x_bf, wq_f, wk_f, wv_f, bq_f, bk_f, bv_f, wo_r, bo_p)

    return out_p[:, :, :d_v]


def reference_jax(x, params, *, num_heads):
    """Pure-JAX f32 reference mirroring the PyTorch forward (batch_size > 1)."""
    wq, bq, wk, bk, wv, bv, wo, bo = params
    d_kh = wq.shape[-1]
    outs = []
    for h in range(num_heads):
        q = x @ wq[h] + bq[h]
        k = x @ wk[h] + bk[h]
        v = x @ wv[h] + bv[h]
        s = jnp.einsum("bqd,bkd->bqk", q, k) / math.sqrt(d_kh)
        w = jax.nn.softmax(s, axis=-1)
        outs.append(jnp.einsum("bqk,bkd->bqd", w, v))
    cat = jnp.concatenate(outs, axis=-1)
    return cat @ wo + bo[0]


def init_params(key, d_in, d_k, d_v, num_heads):
    """Deterministic synthetic parameters (stored pre-transposed: (in, out))."""
    d_kh = d_k // num_heads
    d_vh = d_v // num_heads
    ks = jax.random.split(key, 8)
    wq = jax.random.normal(ks[0], (num_heads, d_in, d_kh), jnp.float32) * 0.1
    bq = jax.random.normal(ks[1], (num_heads, d_kh), jnp.float32) * 0.01
    wk = jax.random.normal(ks[2], (num_heads, d_in, d_kh), jnp.float32) * 0.1
    bk = jax.random.normal(ks[3], (num_heads, d_kh), jnp.float32) * 0.01
    wv = jax.random.normal(ks[4], (num_heads, d_in, d_vh), jnp.float32) * 0.1
    bv = jax.random.normal(ks[5], (num_heads, d_vh), jnp.float32) * 0.01
    wo = jax.random.normal(ks[6], (d_v, d_v), jnp.float32) * 0.1
    bo = jax.random.normal(ks[7], (1, d_v), jnp.float32) * 0.01
    return (wq, bq, wk, bk, wv, bv, wo, bo)


if __name__ == "__main__":
    # Small shapes consistent with the module's forward (batch_size > 1 path).
    B, S = 2, 8
    d_in, d_k, d_v, num_heads = 32, 32, 32, 4

    key = jax.random.PRNGKey(0)
    kx, kp = jax.random.split(key)
    x = jax.random.normal(kx, (B, S, d_in), jnp.float32)
    params = init_params(kp, d_in, d_k, d_v, num_heads)

    out = multi_head_self_attention(x, params, num_heads=num_heads)
    out = jax.block_until_ready(out)

    ref = reference_jax(x, params, num_heads=num_heads)
    assert out.shape == (B, S, d_v)
    # Tolerance loosened vs. the f32 reference because matmul operands are
    # bf16 (f32 accumulation) and the softmax denom uses the approx reciprocal.
    assert jnp.allclose(out, ref, atol=5e-2, rtol=5e-2), "mismatch vs reference"

    print("KERNEL_OK")
</pallas_src>

<mosaic_0001>
module attributes {stable_mosaic.version = 11 : i64} {
  func.func @_mhsa_kernel(%arg0: i32, %arg1: memref<1x8x32xbf16, #tpu.memory_space<vmem>>, %arg2: memref<32x32xbf16, #tpu.memory_space<vmem>>, %arg3: memref<32x32xbf16, #tpu.memory_space<vmem>>, %arg4: memref<32x32xbf16, #tpu.memory_space<vmem>>, %arg5: memref<1x32xf32, #tpu.memory_space<vmem>>, %arg6: memref<1x32xf32, #tpu.memory_space<vmem>>, %arg7: memref<1x32xf32, #tpu.memory_space<vmem>>, %arg8: memref<4x8x128xbf16, #tpu.memory_space<vmem>>, %arg9: memref<1x128xf32, #tpu.memory_space<vmem>>, %arg10: memref<1x8x128xf32, #tpu.memory_space<vmem>>) attributes {dimension_semantics = [#tpu.dimension_semantics<parallel>], iteration_bounds = array<i64: 2>, scalar_prefetch = 0 : i64, scratch_operands = 0 : i64, tpu.core_type = #tpu.core_type<tc>, window_params = [{transform_indices = @transform_0, window_bounds = array<i64: 1, 8, 32>}, {pipeline_mode = #tpu.pipeline_mode<synchronous>, transform_indices = @transform_1, window_bounds = array<i64: 32, 32>}, {pipeline_mode = #tpu.pipeline_mode<synchronous>, transform_indices = @transform_2, window_bounds = array<i64: 32, 32>}, {pipeline_mode = #tpu.pipeline_mode<synchronous>, transform_indices = @transform_3, window_bounds = array<i64: 32, 32>}, {pipeline_mode = #tpu.pipeline_mode<synchronous>, transform_indices = @transform_4, window_bounds = array<i64: 1, 32>}, {pipeline_mode = #tpu.pipeline_mode<synchronous>, transform_indices = @transform_5, window_bounds = array<i64: 1, 32>}, {pipeline_mode = #tpu.pipeline_mode<synchronous>, transform_indices = @transform_6, window_bounds = array<i64: 1, 32>}, {pipeline_mode = #tpu.pipeline_mode<synchronous>, transform_indices = @transform_7, window_bounds = array<i64: 4, 8, 128>}, {pipeline_mode = #tpu.pipeline_mode<synchronous>, transform_indices = @transform_8, window_bounds = array<i64: 1, 128>}, {transform_indices = @transform_9, window_bounds = array<i64: 1, 8, 128>}]} {
    %c0 = arith.constant 0 : index
    %c0_0 = arith.constant 0 : index
    %c0_1 = arith.constant 0 : index
    %0 = vector.load %arg1[%c0, %c0_0, %c0_1] : memref<1x8x32xbf16, #tpu.memory_space<vmem>>, vector<1x8x32xbf16>
    %1 = vector.shape_cast %0 : vector<1x8x32xbf16> to vector<8x32xbf16>
    %c0_2 = arith.constant 0 : index
    %c0_3 = arith.constant 0 : index
    %2 = vector.load %arg2[%c0_2, %c0_3] : memref<32x32xbf16, #tpu.memory_space<vmem>>, vector<32x32xbf16>
    %cst = arith.constant dense<0.000000e+00> : vector<8x32xf32>
    %3 = tpu.matmul %1, %2, %cst {dimension_numbers = #tpu.dot_dimension_numbers<[1], [0], [0], [1], [0, 0, 1, 1], [], []>} : vector<8x32xbf16>, vector<32x32xbf16>, vector<8x32xf32> -> vector<8x32xf32>
    %c0_4 = arith.constant 0 : index
    %c0_5 = arith.constant 0 : index
    %4 = vector.load %arg5[%c0_4, %c0_5] : memref<1x32xf32, #tpu.memory_space<vmem>>, vector<1x32xf32>
    %5 = vector.broadcast %4 : vector<1x32xf32> to vector<8x32xf32>
    %6 = arith.addf %3, %5 : vector<8x32xf32>
    %cst_6 = arith.constant 0.353553385 : f32
    %7 = vector.broadcast %cst_6 : f32 to vector<8x32xf32>
    %8 = arith.mulf %6, %7 : vector<8x32xf32>
    %c0_7 = arith.constant 0 : index
    %c0_8 = arith.constant 0 : index
    %9 = vector.load %arg3[%c0_7, %c0_8] : memref<32x32xbf16, #tpu.memory_space<vmem>>, vector<32x32xbf16>
    %cst_9 = arith.constant dense<0.000000e+00> : vector<8x32xf32>
    %10 = tpu.matmul %1, %9, %cst_9 {dimension_numbers = #tpu.dot_dimension_numbers<[1], [0], [0], [1], [0, 0, 1, 1], [], []>} : vector<8x32xbf16>, vector<32x32xbf16>, vector<8x32xf32> -> vector<8x32xf32>
    %c0_10 = arith.constant 0 : index
    %c0_11 = arith.constant 0 : index
    %11 = vector.load %arg6[%c0_10, %c0_11] : memref<1x32xf32, #tpu.memory_space<vmem>>, vector<1x32xf32>
    %12 = vector.broadcast %11 : vector<1x32xf32> to vector<8x32xf32>
    %13 = arith.addf %10, %12 : vector<8x32xf32>
    %c0_12 = arith.constant 0 : index
    %c0_13 = arith.constant 0 : index
    %14 = vector.load %arg4[%c0_12, %c0_13] : memref<32x32xbf16, #tpu.memory_space<vmem>>, vector<32x32xbf16>
    %cst_14 = arith.constant dense<0.000000e+00> : vector<8x32xf32>
    %15 = tpu.matmul %1, %14, %cst_14 {dimension_numbers = #tpu.dot_dimension_numbers<[1], [0], [0], [1], [0, 0, 1, 1], [], []>} : vector<8x32xbf16>, vector<32x32xbf16>, vector<8x32xf32> -> vector<8x32xf32>
    %c0_15 = arith.constant 0 : index
    %c0_16 = arith.constant 0 : index
    %16 = vector.load %arg7[%c0_15, %c0_16] : memref<1x32xf32, #tpu.memory_space<vmem>>, vector<1x32xf32>
    %17 = vector.broadcast %16 : vector<1x32xf32> to vector<8x32xf32>
    %18 = arith.addf %15, %17 : vector<8x32xf32>
    %19 = arith.truncf %8 : vector<8x32xf32> to vector<8x32xbf16>
    %20 = arith.truncf %13 : vector<8x32xf32> to vector<8x32xbf16>
    %21 = arith.truncf %18 : vector<8x32xf32> to vector<8x32xbf16>
    %cst_17 = arith.constant 0.000000e+00 : f32
    %22 = vector.broadcast %cst_17 : f32 to vector<8x128xf32>
    %23 = vector.extract_strided_slice %19 {offsets = [0, 0], sizes = [8, 8], strides = [1, 1]} : vector<8x32xbf16> to vector<8x8xbf16>
    %24 = vector.shape_cast %23 : vector<8x8xbf16> to vector<1x8x8xbf16>
    %25 = vector.extract_strided_slice %20 {offsets = [0, 0], sizes = [8, 8], strides = [1, 1]} : vector<8x32xbf16> to vector<8x8xbf16>
    %26 = vector.shape_cast %25 : vector<8x8xbf16> to vector<1x8x8xbf16>
    %27 = vector.extract_strided_slice %21 {offsets = [0, 0], sizes = [8, 8], strides = [1, 1]} : vector<8x32xbf16> to vector<8x8xbf16>
    %28 = vector.shape_cast %27 : vector<8x8xbf16> to vector<1x8x8xbf16>
    "tpu.trace_start"() <{level = 10 : i32, message = "bqd,bkd->bqk"}> : () -> ()
    %cst_18 = arith.constant dense<0.000000e+00> : vector<1x8x8xf32>
    %29 = tpu.matmul %24, %26, %cst_18 {dimension_numbers = #tpu.dot_dimension_numbers<[2], [2], [1], [1], [0, 0, 0, 1, 1, 1], [0], [0]>} : vector<1x8x8xbf16>, vector<1x8x8xbf16>, vector<1x8x8xf32> -> vector<1x8x8xf32>
    "tpu.trace_stop"() : () -> ()
    %cst_19 = arith.constant dense<0xFF800000> : vector<1x8xf32>
    %30 = vector.multi_reduction <maximumf>, %29, %cst_19 [2] : vector<1x8x8xf32> to vector<1x8xf32>
    %31 = vector.shape_cast %30 : vector<1x8xf32> to vector<1x8x1xf32>
    %32 = vector.broadcast %31 : vector<1x8x1xf32> to vector<1x8x8xf32>
    %33 = arith.subf %29, %32 : vector<1x8x8xf32>
    %34 = math.exp %33 : vector<1x8x8xf32>
    %cst_20 = arith.constant dense<0.000000e+00> : vector<1x8xf32>
    %35 = vector.multi_reduction <add>, %34, %cst_20 [2] : vector<1x8x8xf32> to vector<1x8xf32>
    %36 = vector.shape_cast %35 : vector<1x8xf32> to vector<1x8x1xf32>
    %37 = tpu.reciprocal %36 {approx = true} : vector<1x8x1xf32> -> vector<1x8x1xf32>
    %38 = vector.broadcast %37 : vector<1x8x1xf32> to vector<1x8x8xf32>
    %39 = arith.mulf %34, %38 : vector<1x8x8xf32>
    %40 = arith.truncf %39 : vector<1x8x8xf32> to vector<1x8x8xbf16>
    "tpu.trace_start"() <{level = 10 : i32, message = "bqk,bkd->bqd"}> : () -> ()
    %cst_21 = arith.constant dense<0.000000e+00> : vector<1x8x8xf32>
    %41 = tpu.matmul %40, %28, %cst_21 {dimension_numbers = #tpu.dot_dimension_numbers<[2], [1], [1], [2], [0, 0, 0, 1, 1, 2], [0], [0]>} : vector<1x8x8xbf16>, vector<1x8x8xbf16>, vector<1x8x8xf32> -> vector<1x8x8xf32>
    "tpu.trace_stop"() : () -> ()
    %42 = vector.shape_cast %41 : vector<1x8x8xf32> to vector<8x8xf32>
    %43 = arith.truncf %42 : vector<8x8xf32> to vector<8x8xbf16>
    %c0_22 = arith.constant 0 : index
    %c0_23 = arith.constant 0 : index
    %c0_24 = arith.constant 0 : index
    %44 = vector.load %arg8[%c0_22, %c0_23, %c0_24] : memref<4x8x128xbf16, #tpu.memory_space<vmem>>, vector<1x8x128xbf16>
    %45 = vector.shape_cast %44 : vector<1x8x128xbf16> to vector<8x128xbf16>
    %cst_25 = arith.constant dense<0.000000e+00> : vector<8x128xf32>
    %46 = tpu.matmul %43, %45, %cst_25 {dimension_numbers = #tpu.dot_dimension_numbers<[1], [0], [0], [1], [0, 0, 1, 1], [], []>} : vector<8x8xbf16>, vector<8x128xbf16>, vector<8x128xf32> -> vector<8x128xf32>
    %47 = arith.addf %22, %46 : vector<8x128xf32>
    %48 = vector.extract_strided_slice %19 {offsets = [0, 8], sizes = [8, 8], strides = [1, 1]} : vector<8x32xbf16> to vector<8x8xbf16>
    %49 = vector.shape_cast %48 : vector<8x8xbf16> to vector<1x8x8xbf16>
    %50 = vector.extract_strided_slice %20 {offsets = [0, 8], sizes = [8, 8], strides = [1, 1]} : vector<8x32xbf16> to vector<8x8xbf16>
    %51 = vector.shape_cast %50 : vector<8x8xbf16> to vector<1x8x8xbf16>
    %52 = vector.extract_strided_slice %21 {offsets = [0, 8], sizes = [8, 8], strides = [1, 1]} : vector<8x32xbf16> to vector<8x8xbf16>
    %53 = vector.shape_cast %52 : vector<8x8xbf16> to vector<1x8x8xbf16>
    "tpu.trace_start"() <{level = 10 : i32, message = "bqd,bkd->bqk"}> : () -> ()
    %cst_26 = arith.constant dense<0.000000e+00> : vector<1x8x8xf32>
    %54 = tpu.matmul %49, %51, %cst_26 {dimension_numbers = #tpu.dot_dimension_numbers<[2], [2], [1], [1], [0, 0, 0, 1, 1, 1], [0], [0]>} : vector<1x8x8xbf16>, vector<1x8x8xbf16>, vector<1x8x8xf32> -> vector<1x8x8xf32>
    "tpu.trace_stop"() : () -> ()
    %cst_27 = arith.constant dense<0xFF800000> : vector<1x8xf32>
    %55 = vector.multi_reduction <maximumf>, %54, %cst_27 [2] : vector<1x8x8xf32> to vector<1x8xf32>
    %56 = vector.shape_cast %55 : vector<1x8xf32> to vector<1x8x1xf32>
    %57 = vector.broadcast %56 : vector<1x8x1xf32> to vector<1x8x8xf32>
    %58 = arith.subf %54, %57 : vector<1x8x8xf32>
    %59 = math.exp %58 : vector<1x8x8xf32>
    %cst_28 = arith.constant dense<0.000000e+00> : vector<1x8xf32>
    %60 = vector.multi_reduction <add>, %59, %cst_28 [2] : vector<1x8x8xf32> to vector<1x8xf32>
    %61 = vector.shape_cast %60 : vector<1x8xf32> to vector<1x8x1xf32>
    %62 = tpu.reciprocal %61 {approx = true} : vector<1x8x1xf32> -> vector<1x8x1xf32>
    %63 = vector.broadcast %62 : vector<1x8x1xf32> to vector<1x8x8xf32>
    %64 = arith.mulf %59, %63 : vector<1x8x8xf32>
    %65 = arith.truncf %64 : vector<1x8x8xf32> to vector<1x8x8xbf16>
    "tpu.trace_start"() <{level = 10 : i32, message = "bqk,bkd->bqd"}> : () -> ()
    %cst_29 = arith.constant dense<0.000000e+00> : vector<1x8x8xf32>
    %66 = tpu.matmul %65, %53, %cst_29 {dimension_numbers = #tpu.dot_dimension_numbers<[2], [1], [1], [2], [0, 0, 0, 1, 1, 2], [0], [0]>} : vector<1x8x8xbf16>, vector<1x8x8xbf16>, vector<1x8x8xf32> -> vector<1x8x8xf32>
    "tpu.trace_stop"() : () -> ()
    %67 = vector.shape_cast %66 : vector<1x8x8xf32> to vector<8x8xf32>
    %68 = arith.truncf %67 : vector<8x8xf32> to vector<8x8xbf16>
    %c1 = arith.constant 1 : index
    %c0_30 = arith.constant 0 : index
    %c0_31 = arith.constant 0 : index
    %69 = vector.load %arg8[%c1, %c0_30, %c0_31] : memref<4x8x128xbf16, #tpu.memory_space<vmem>>, vector<1x8x128xbf16>
    %70 = vector.shape_cast %69 : vector<1x8x128xbf16> to vector<8x128xbf16>
    %cst_32 = arith.constant dense<0.000000e+00> : vector<8x128xf32>
    %71 = tpu.matmul %68, %70, %cst_32 {dimension_numbers = #tpu.dot_dimension_numbers<[1], [0], [0], [1], [0, 0, 1, 1], [], []>} : vector<8x8xbf16>, vector<8x128xbf16>, vector<8x128xf32> -> vector<8x128xf32>
    %72 = arith.addf %47, %71 : vector<8x128xf32>
    %73 = vector.extract_strided_slice %19 {offsets = [0, 16], sizes = [8, 8], strides = [1, 1]} : vector<8x32xbf16> to vector<8x8xbf16>
    %74 = vector.shape_cast %73 : vector<8x8xbf16> to vector<1x8x8xbf16>
    %75 = vector.extract_strided_slice %20 {offsets = [0, 16], sizes = [8, 8], strides = [1, 1]} : vector<8x32xbf16> to vector<8x8xbf16>
    %76 = vector.shape_cast %75 : vector<8x8xbf16> to vector<1x8x8xbf16>
    %77 = vector.extract_strided_slice %21 {offsets = [0, 16], sizes = [8, 8], strides = [1, 1]} : vector<8x32xbf16> to vector<8x8xbf16>
    %78 = vector.shape_cast %77 : vector<8x8xbf16> to vector<1x8x8xbf16>
    "tpu.trace_start"() <{level = 10 : i32, message = "bqd,bkd->bqk"}> : () -> ()
    %cst_33 = arith.constant dense<0.000000e+00> : vector<1x8x8xf32>
    %79 = tpu.matmul %74, %76, %cst_33 {dimension_numbers = #tpu.dot_dimension_numbers<[2], [2], [1], [1], [0, 0, 0, 1, 1, 1], [0], [0]>} : vector<1x8x8xbf16>, vector<1x8x8xbf16>, vector<1x8x8xf32> -> vector<1x8x8xf32>
    "tpu.trace_stop"() : () -> ()
    %cst_34 = arith.constant dense<0xFF800000> : vector<1x8xf32>
    %80 = vector.multi_reduction <maximumf>, %79, %cst_34 [2] : vector<1x8x8xf32> to vector<1x8xf32>
    %81 = vector.shape_cast %80 : vector<1x8xf32> to vector<1x8x1xf32>
    %82 = vector.broadcast %81 : vector<1x8x1xf32> to vector<1x8x8xf32>
    %83 = arith.subf %79, %82 : vector<1x8x8xf32>
    %84 = math.exp %83 : vector<1x8x8xf32>
    %cst_35 = arith.constant dense<0.000000e+00> : vector<1x8xf32>
    %85 = vector.multi_reduction <add>, %84, %cst_35 [2] : vector<1x8x8xf32> to vector<1x8xf32>
    %86 = vector.shape_cast %85 : vector<1x8xf32> to vector<1x8x1xf32>
    %87 = tpu.reciprocal %86 {approx = true} : vector<1x8x1xf32> -> vector<1x8x1xf32>
    %88 = vector.broadcast %87 : vector<1x8x1xf32> to vector<1x8x8xf32>
    %89 = arith.mulf %84, %88 : vector<1x8x8xf32>
    %90 = arith.truncf %89 : vector<1x8x8xf32> to vector<1x8x8xbf16>
    "tpu.trace_start"() <{level = 10 : i32, message = "bqk,bkd->bqd"}> : () -> ()
    %cst_36 = arith.constant dense<0.000000e+00> : vector<1x8x8xf32>
    %91 = tpu.matmul %90, %78, %cst_36 {dimension_numbers = #tpu.dot_dimension_numbers<[2], [1], [1], [2], [0, 0, 0, 1, 1, 2], [0], [0]>} : vector<1x8x8xbf16>, vector<1x8x8xbf16>, vector<1x8x8xf32> -> vector<1x8x8xf32>
    "tpu.trace_stop"() : () -> ()
    %92 = vector.shape_cast %91 : vector<1x8x8xf32> to vector<8x8xf32>
    %93 = arith.truncf %92 : vector<8x8xf32> to vector<8x8xbf16>
    %c2 = arith.constant 2 : index
    %c0_37 = arith.constant 0 : index
    %c0_38 = arith.constant 0 : index
    %94 = vector.load %arg8[%c2, %c0_37, %c0_38] : memref<4x8x128xbf16, #tpu.memory_space<vmem>>, vector<1x8x128xbf16>
    %95 = vector.shape_cast %94 : vector<1x8x128xbf16> to vector<8x128xbf16>
    %cst_39 = arith.constant dense<0.000000e+00> : vector<8x128xf32>
    %96 = tpu.matmul %93, %95, %cst_39 {dimension_numbers = #tpu.dot_dimension_numbers<[1], [0], [0], [1], [0, 0, 1, 1], [], []>} : vector<8x8xbf16>, vector<8x128xbf16>, vector<8x128xf32> -> vector<8x128xf32>
    %97 = arith.addf %72, %96 : vector<8x128xf32>
    %98 = vector.extract_strided_slice %19 {offsets = [0, 24], sizes = [8, 8], strides = [1, 1]} : vector<8x32xbf16> to vector<8x8xbf16>
    %99 = vector.shape_cast %98 : vector<8x8xbf16> to vector<1x8x8xbf16>
    %100 = vector.extract_strided_slice %20 {offsets = [0, 24], sizes = [8, 8], strides = [1, 1]} : vector<8x32xbf16> to vector<8x8xbf16>
    %101 = vector.shape_cast %100 : vector<8x8xbf16> to vector<1x8x8xbf16>
    %102 = vector.extract_strided_slice %21 {offsets = [0, 24], sizes = [8, 8], strides = [1, 1]} : vector<8x32xbf16> to vector<8x8xbf16>
    %103 = vector.shape_cast %102 : vector<8x8xbf16> to vector<1x8x8xbf16>
    "tpu.trace_start"() <{level = 10 : i32, message = "bqd,bkd->bqk"}> : () -> ()
    %cst_40 = arith.constant dense<0.000000e+00> : vector<1x8x8xf32>
    %104 = tpu.matmul %99, %101, %cst_40 {dimension_numbers = #tpu.dot_dimension_numbers<[2], [2], [1], [1], [0, 0, 0, 1, 1, 1], [0], [0]>} : vector<1x8x8xbf16>, vector<1x8x8xbf16>, vector<1x8x8xf32> -> vector<1x8x8xf32>
    "tpu.trace_stop"() : () -> ()
    %cst_41 = arith.constant dense<0xFF800000> : vector<1x8xf32>
    %105 = vector.multi_reduction <maximumf>, %104, %cst_41 [2] : vector<1x8x8xf32> to vector<1x8xf32>
    %106 = vector.shape_cast %105 : vector<1x8xf32> to vector<1x8x1xf32>
    %107 = vector.broadcast %106 : vector<1x8x1xf32> to vector<1x8x8xf32>
    %108 = arith.subf %104, %107 : vector<1x8x8xf32>
    %109 = math.exp %108 : vector<1x8x8xf32>
    %cst_42 = arith.constant dense<0.000000e+00> : vector<1x8xf32>
    %110 = vector.multi_reduction <add>, %109, %cst_42 [2] : vector<1x8x8xf32> to vector<1x8xf32>
    %111 = vector.shape_cast %110 : vector<1x8xf32> to vector<1x8x1xf32>
    %112 = tpu.reciprocal %111 {approx = true} : vector<1x8x1xf32> -> vector<1x8x1xf32>
    %113 = vector.broadcast %112 : vector<1x8x1xf32> to vector<1x8x8xf32>
    %114 = arith.mulf %109, %113 : vector<1x8x8xf32>
    %115 = arith.truncf %114 : vector<1x8x8xf32> to vector<1x8x8xbf16>
    "tpu.trace_start"() <{level = 10 : i32, message = "bqk,bkd->bqd"}> : () -> ()
    %cst_43 = arith.constant dense<0.000000e+00> : vector<1x8x8xf32>
    %116 = tpu.matmul %115, %103, %cst_43 {dimension_numbers = #tpu.dot_dimension_numbers<[2], [1], [1], [2], [0, 0, 0, 1, 1, 2], [0], [0]>} : vector<1x8x8xbf16>, vector<1x8x8xbf16>, vector<1x8x8xf32> -> vector<1x8x8xf32>
    "tpu.trace_stop"() : () -> ()
    %117 = vector.shape_cast %116 : vector<1x8x8xf32> to vector<8x8xf32>
    %118 = arith.truncf %117 : vector<8x8xf32> to vector<8x8xbf16>
    %c3 = arith.constant 3 : index
    %c0_44 = arith.constant 0 : index
    %c0_45 = arith.constant 0 : index
    %119 = vector.load %arg8[%c3, %c0_44, %c0_45] : memref<4x8x128xbf16, #tpu.memory_space<vmem>>, vector<1x8x128xbf16>
    %120 = vector.shape_cast %119 : vector<1x8x128xbf16> to vector<8x128xbf16>
    %cst_46 = arith.constant dense<0.000000e+00> : vector<8x128xf32>
    %121 = tpu.matmul %118, %120, %cst_46 {dimension_numbers = #tpu.dot_dimension_numbers<[1], [0], [0], [1], [0, 0, 1, 1], [], []>} : vector<8x8xbf16>, vector<8x128xbf16>, vector<8x128xf32> -> vector<8x128xf32>
    %122 = arith.addf %97, %121 : vector<8x128xf32>
    %c0_47 = arith.constant 0 : index
    %c0_48 = arith.constant 0 : index
    %123 = vector.load %arg9[%c0_47, %c0_48] : memref<1x128xf32, #tpu.memory_space<vmem>>, vector<1x128xf32>
    %124 = vector.broadcast %123 : vector<1x128xf32> to vector<8x128xf32>
    %125 = arith.addf %122, %124 : vector<8x128xf32>
    %126 = vector.shape_cast %125 : vector<8x128xf32> to vector<1x8x128xf32>
    %c0_49 = arith.constant 0 : index
    %c0_50 = arith.constant 0 : index
    %c0_51 = arith.constant 0 : index
    %127 = vector.load %arg10[%c0_49, %c0_50, %c0_51] : memref<1x8x128xf32, #tpu.memory_space<vmem>>, vector<1x8x128xf32>
    tpu.vector_store %arg10[%c0_49, %c0_50, %c0_51], %126 {strides = array<i32>} : memref<1x8x128xf32, #tpu.memory_space<vmem>>, vector<1x8x128xf32>,
    return
  }
  func.func @transform_0(%arg0: i32) -> (i32, i32, i32) {
    %c0_i32 = arith.constant 0 : i32
    %c0_i32_0 = arith.constant 0 : i32
    %c0_i32_1 = arith.constant 0 : i32
    return %arg0, %c0_i32, %c0_i32_0 : i32, i32, i32
  }
  func.func @transform_1(%arg0: i32) -> (i32, i32) {
    %c0_i32 = arith.constant 0 : i32
    %c0_i32_0 = arith.constant 0 : i32
    %c0_i32_1 = arith.constant 0 : i32
    return %c0_i32, %c0_i32_0 : i32, i32
  }
  func.func @transform_2(%arg0: i32) -> (i32, i32) {
    %c0_i32 = arith.constant 0 : i32
    %c0_i32_0 = arith.constant 0 : i32
    %c0_i32_1 = arith.constant 0 : i32
    return %c0_i32, %c0_i32_0 : i32, i32
  }
  func.func @transform_3(%arg0: i32) -> (i32, i32) {
    %c0_i32 = arith.constant 0 : i32
    %c0_i32_0 = arith.constant 0 : i32
    %c0_i32_1 = arith.constant 0 : i32
    return %c0_i32, %c0_i32_0 : i32, i32
  }
  func.func @transform_4(%arg0: i32) -> (i32, i32) {
    %c0_i32 = arith.constant 0 : i32
    %c0_i32_0 = arith.constant 0 : i32
    %c0_i32_1 = arith.constant 0 : i32
    return %c0_i32, %c0_i32_0 : i32, i32
  }
  func.func @transform_5(%arg0: i32) -> (i32, i32) {
    %c0_i32 = arith.constant 0 : i32
    %c0_i32_0 = arith.constant 0 : i32
    %c0_i32_1 = arith.constant 0 : i32
    return %c0_i32, %c0_i32_0 : i32, i32
  }
  func.func @transform_6(%arg0: i32) -> (i32, i32) {
    %c0_i32 = arith.constant 0 : i32
    %c0_i32_0 = arith.constant 0 : i32
    %c0_i32_1 = arith.constant 0 : i32
    return %c0_i32, %c0_i32_0 : i32, i32
  }
  func.func @transform_7(%arg0: i32) -> (i32, i32, i32) {
    %c0_i32 = arith.constant 0 : i32
    %c0_i32_0 = arith.constant 0 : i32
    %c0_i32_1 = arith.constant 0 : i32
    %c0_i32_2 = arith.constant 0 : i32
    return %c0_i32, %c0_i32_0, %c0_i32_1 : i32, i32, i32
  }
  func.func @transform_8(%arg0: i32) -> (i32, i32) {
    %c0_i32 = arith.constant 0 : i32
    %c0_i32_0 = arith.constant 0 : i32
    %c0_i32_1 = arith.constant 0 : i32
    return %c0_i32, %c0_i32_0 : i32, i32
  }
  func.func @transform_9(%arg0: i32) -> (i32, i32, i32) {
    %c0_i32 = arith.constant 0 : i32
    %c0_i32_0 = arith.constant 0 : i32
    %c0_i32_1 = arith.constant 0 : i32
    return %arg0, %c0_i32, %c0_i32_0 : i32, i32, i32
  }
}

</mosaic_0001>

<bundles_post_ra>
// kernel: tpu_custom_call.1
= control target key start
LH: loop header
LB: loop body
LE: loop exit
PB: predicated region body
PF: predicated region fallthrough
CT: control target
= control target key end

     0   :  { %s2280_s0 = inlined_call_operand.hbm [shape: bf16[2,8,32], index: 0, kind: input, shape index: {}]   ;;  %s2281_s1 = inlined_call_operand.hbm [shape: bf16[32,32], index: 1, kind: input, shape index: {}]   ;;  %s2282_s2 = inlined_call_operand.hbm [shape: bf16[32,32], index: 2, kind: input, shape index: {}]   ;;  %s2283_s3 = inlined_call_operand.hbm [shape: bf16[32,32], index: 3, kind: input, shape index: {}]   ;;  %s2284_s4 = inlined_call_operand.vmem [shape: f32[1,32], index: 4, kind: input, shape index: {}]   ;;  %s2285_s5 = inlined_call_operand.vmem [shape: f32[1,32], index: 5, kind: input, shape index: {}]   ;;  %s2286_s6 = inlined_call_operand.vmem [shape: f32[1,32], index: 6, kind: input, shape index: {}]   ;;  %s2287_s7 = inlined_call_operand.vmem [shape: bf16[4,8,128], index: 7, kind: input, shape index: {}]   ;;  %s2288_s8 = inlined_call_operand.vmem [shape: f32[1,128], index: 8, kind: input, shape index: {}]   ;;  %s2289_s9 = inlined_call_operand.hbm [shape: f32[2,8,128], index: 9, kind: output, shape index: {}]  }
   0x1   :  { %2296 = sst [smem:[#allocation17_spill]] %s2289_s9 }
   0x2   :  { %14 = vsyncpa [#allocation3], 0 }
   0x3   :  { %16 = vsyncpa [#allocation3 + $0x1], 0 }
   0x4   :  { %17 = vsyncpa [#allocation6], 0 }
   0x5   :  { %18 = vsyncpa [#allocation9], 0 }
   0x6   :  { %19 = vsyncpa [#allocation4], 0 }
   0x7   :  { %21 = vsyncpa [#allocation4 + $0x1], 0  ;;  %s1882_s30 = smov 0   ;;  %s1884_s10 = smov 0  }
   0x8   :  { %s1886_s11 = smov 0   ;;  %s1888_s12 = smov 0  }
   0x9 LB: > { %2297 = sst [smem:[#allocation15_spill]] %s1806_s30  ;;  %s1903_s13 = sadd.s32 4294967295, %s1818_s12   ;;  %s1818_s12 = sphi %s1888_s12, %s2322_s12   ;;  %s1814_s11 = sphi %s1886_s11, %s2321_s11   ;;  %s1810_s10 = sphi %s1884_s10, %s2320_s10   ;;  %s1806_s30 = sphi %s1882_s30, %s2319_s30  }
   0xa   : > { %s1349_s14 = sadd.s32 4294967294, %s1818_s12   ;;  %p47_p0 = scmp.ne.s32.totalorder %s1810_s10, %s1806_s30 }
   0xb   : > { %p2290_p1 = scmp.eq.s32.totalorder %s1903_s13, 0  ;;  %p245_p3 = scmp.eq.s32.totalorder %s1349_s14, 1 }
   0xc   : > { %p1350_p5 = scmp.ge.s32.totalorder %s1818_s12, 1  ;;  %p252_p7 = scmp.lt.s32.totalorder %s1818_s12, 3 }
   0xd   : > { %p1912_p4 = por %p2290_p1, %p47_p0  ;;  %p1917_p6 = por %p245_p3, %p47_p0 }
   0xe   : > { %p1922_p8 = pnand %p1350_p5, %p252_p7  ;;  %s1820_s18 = smov [#allocation5]  }
   0xf   : > { %s2298_s15 = scalar_select %p1912_p4, 1, 0 }
  0x10   : > { %s2299_s16 = scalar_select %p1917_p6, 1, 0 }
  0x11   : > { %s2301_s17 = scalar_select %p1922_p8, 1, 0 }
  0x12   : > { %2300 = sst [smem:[#allocation16_spill]] %s2299_s16  ;;  %s264_s19 = sshll.u32 %s1820_s18, 4  ;;  %s1926_s19 = int_to_ptr.vmem [resolvable:$true] %s264_s19 }
  0x13   : > { %p1540_p9 = pneg %p1922_p8  ;;  %s1821_s21 = smov [#allocation7]  }
  0x14   : > { %s277_s22 = sshll.u32 %s1821_s21, 4  ;;  %s1822_s23 = smov [#allocation8]   ;;  %s1937_s22 = int_to_ptr.vmem [resolvable:$true] %s277_s22 }
  0x15   : > { %p1933_p11 = pnand %p1540_p9, %p2290_p1  ;;  %s1939_s24 = sshll.u32 %s1822_s23, 4  ;;  %s291_s24 = int_to_ptr.vmem [resolvable:$true] %s1939_s24 }
  0x16   : > { %s1630_s27 = scalar_lea.hbm %s2281_s1, 256 }
  0x17   : > { %p1631_p12 = scmp.ne.s32.totalorder %s2281_s1, %s1630_s27  ;;  %p1949_p13 = pneg %p1933_p11 }
  0x18   : > { %p1637_p5 = scmp.lt.u32.totalorder %s1630_s27, %s2281_s1 }
  0x19   : > { %p1633_p0 = pnand %p1949_p13, %p1631_p12 }
  0x1b   : > { %p1634_p3 = pneg %p1633_p0 }
  0x1d   : > { %p1639_p7 = pnand %p1637_p5, %p1634_p3 }
  0x1f   : > { %1642 = shalt.err (!%p1639_p7)
}
  0x20   : > { %s1643_s23 = scalar_lea.vmem %s1926_s19, 256  ;;  %p1651_p2 = scmp.lt.s32.totalorder %s1926_s19, %s1926_s19 }
  0x21   : > { %p1644_p9 = scmp.ne.s32.totalorder %s1926_s19, %s1643_s23  ;;  %p1652_p6 = scmp.lt.s32.totalorder %s1643_s23, %s1643_s23 }
  0x23   : > { %p1646_p10 = pnand %p1644_p9, %p1949_p13  ;;  %p1653_p12 = por %p1652_p6, %p1651_p2 }
  0x25   : > { %p1647_p1 = pneg %p1646_p10 }
  0x27   : > { %p1654_p0 = pnand %p1653_p12, %p1647_p1 }
  0x29   : > { %1657 = shalt.err (!%p1654_p0)
}
  0x2a   : > { %s1823_s25 = smov 64   ;;  %s1824_s26 = smov 4  }
  0x2b   : > { %1543 = dma.hbm_to_vmem [thread:$0]  (!%p1933_p11), %s2281_s1, 256, %s1926_s19, [#allocation6], %s1823_s25, %s1823_s25, %s1824_s26  }
  0x2c   : > { %s1658_s21 = scalar_lea.hbm %s2282_s2, 256 }
  0x2d   : > { %p1659_p1 = scmp.ne.s32.totalorder %s2282_s2, %s1658_s21  ;;  %p1665_p10 = scmp.lt.u32.totalorder %s1658_s21, %s2282_s2 }
  0x2f   : > { %p1661_p2 = pnand %p1659_p1, %p1949_p13 }
  0x31   : > { %p1662_p6 = pneg %p1661_p2 }
  0x33   : > { %p1667_p3 = pnand %p1665_p10, %p1662_p6 }
  0x35   : > { %1670 = shalt.err (!%p1667_p3)
}
  0x36   : > { %s1671_s19 = scalar_lea.vmem %s1937_s22, 256  ;;  %p1679_p12 = scmp.lt.s32.totalorder %s1937_s22, %s1937_s22 }
  0x37   : > { %p1672_p5 = scmp.ne.s32.totalorder %s1937_s22, %s1671_s19  ;;  %p1680_p0 = scmp.lt.s32.totalorder %s1671_s19, %s1671_s19 }
  0x39   : > { %p1674_p7 = pnand %p1672_p5, %p1949_p13  ;;  %p1681_p1 = por %p1680_p0, %p1679_p12 }
  0x3b   : > { %p1675_p9 = pneg %p1674_p7 }
  0x3d   : > { %p1682_p2 = pnand %p1681_p1, %p1675_p9 }
  0x3f   : > { %1685 = shalt.err (!%p1682_p2)
}
  0x40   : > { %1546 = dma.hbm_to_vmem [thread:$0]  (!%p1933_p11), %s2282_s2, 256, %s1937_s22, [#allocation6], %s1823_s25, %s1823_s25, %s1824_s26  }
  0x41   : > { %s1686_s28 = scalar_lea.hbm %s2283_s3, 256 }
  0x42   : > { %p1687_p6 = scmp.ne.s32.totalorder %s2283_s3, %s1686_s28  ;;  %p1693_p5 = scmp.lt.u32.totalorder %s1686_s28, %s2283_s3 }
  0x44   : > { %p1689_p10 = pnand %p1687_p6, %p1949_p13 }
  0x46   : > { %p1690_p3 = pneg %p1689_p10 }
  0x48   : > { %p1695_p7 = pnand %p1693_p5, %p1690_p3 }
  0x4a   : > { %1698 = shalt.err (!%p1695_p7)
}
  0x4b   : > { %s1699_s19 = scalar_lea.vmem %s291_s24, 256  ;;  %p1707_p1 = scmp.lt.s32.totalorder %s291_s24, %s291_s24 }
  0x4c   : > { %p1700_p9 = scmp.ne.s32.totalorder %s291_s24, %s1699_s19  ;;  %p1708_p2 = scmp.lt.s32.totalorder %s1699_s19, %s1699_s19 }
  0x4e   : > { %p1702_p12 = pnand %p1700_p9, %p1949_p13  ;;  %p1709_p4 = por %p1708_p2, %p1707_p1 }
  0x50   : > { %p1703_p0 = pneg %p1702_p12 }
  0x52   : > { %p1710_p8 = pnand %p1709_p4, %p1703_p0 }
  0x54   : > { %1713 = shalt.err (!%p1710_p8)
}
  0x55   : > { %1549 = dma.hbm_to_vmem [thread:$0]  (!%p1933_p11), %s2283_s3, 256, %s291_s24, [#allocation9], %s1823_s25, %s1823_s25, %s1824_s26  }
  0x56   : > { %s2022_s14 = sadd.s32 1, %s1818_s12   ;;  %s34_s30 = sadd.s32 1, %s1814_s11 }
  0x57   : > { %s31_s20 = ssub.s32 %s1818_s12, %s2022_s14  ;;  %p41_p8 = scmp.ne.s32.totalorder %s1814_s11, %s1810_s10 }
  0x58   : > { %p32_p4 = scmp.eq.s32.totalorder %s31_s20, 0  ;;  %p42_p13 = scmp.eq.s32.totalorder %s1818_s12, 0 }
  0x59   : > { %p1561_p6 = scmp.lt.s32.totalorder %s1818_s12, 2  ;;  %p2304_p3 = scmp.eq.s32.totalorder %s1903_s13, 1 }
  0x5a   : > { %s2032_s16 = scalar_select %p32_p4, %s1814_s11, %s34_s30  }
  0x5b   : > { %p43_p10 = por %p42_p13, %p41_p8  ;;  %p2036_p5 = por %p2304_p3, %p41_p8 }
  0x5c   : > { %s319_s28 = sand.u32 1, %s1814_s11   ;;  %s1356_s29 = sshll.u32 %s1818_s12, 6 }
  0x5d   : > { %s1355_s24 = sshll.u32 %s319_s28, 2  ;;  %s2045_s18 = scalar_lea.hbm %s2280_s0, %s1356_s29 }
  0x5e   : > { %s323_s21 = scalar_lea.vmem [#allocation2], %s1355_s24  ;;  %p2047_p11 = pnand %p1561_p6, %p43_p10 }
  0x5f   : > { %s330_s23 = sshll.u32 %s323_s21, 4  ;;  %s320_s22 = scalar_lea.sflag [#allocation3], %s319_s28  ;;  %s2051_s23 = int_to_ptr.vmem [resolvable:$true] %s330_s23 }
  0x60   : > { %s1714_s9 = scalar_lea.hbm %s2045_s18, 64  ;;  %p1716_p9 = pneg %p2047_p11 }
  0x61   : > { %p1715_p7 = scmp.ne.s32.totalorder %s2045_s18, %s1714_s9  ;;  %s1719_s29 = scalar_lea.hbm %s2280_s0, 128 }
  0x62   : > { %p1720_p1 = scmp.lt.u32.totalorder %s2045_s18, %s2280_s0  ;;  %p1721_p2 = scmp.lt.u32.totalorder %s1719_s29, %s1714_s9 }
  0x63   : > { %p1717_p12 = pnand %p1716_p9, %p1715_p7  ;;  %p1723_p8 = scmp.lt.u32.totalorder %s1714_s9, %s2045_s18 }
  0x64   : > { %p1722_p4 = por %p1721_p2, %p1720_p1 }
  0x65   : > { %p1718_p0 = pneg %p1717_p12 }
  0x66   : > { %p1724_p13 = por %p1723_p8, %p1722_p4 }
  0x68   : > { %p1725_p6 = pnand %p1724_p13, %p1718_p0 }
  0x6a   : > { %1728 = shalt.err (!%p1725_p6)
}
  0x6b   : > { %s1729_s28 = scalar_lea.vmem %s2051_s23, 64  ;;  %s1825_s26 = smov [#allocation2]  }
  0x6c   : > { %p1730_p10 = scmp.ne.s32.totalorder %s2051_s23, %s1729_s28  ;;  %s1734_s21 = sshll.u32 %s1825_s26, 4  ;;  %s1735_s21 = int_to_ptr.vmem [resolvable:$false] %s1734_s21 }
  0x6d   : > { %s1736_s20 = scalar_lea.vmem %s1735_s21, 128  ;;  %p1737_p12 = scmp.lt.s32.totalorder %s2051_s23, %s1735_s21 }
  0x6e   : > { %p1732_p3 = pnand %p1730_p10, %p1716_p9  ;;  %p1738_p1 = scmp.lt.s32.totalorder %s1736_s20, %s1729_s28 }
  0x70   : > { %p1733_p7 = pneg %p1732_p3  ;;  %p1739_p2 = por %p1738_p1, %p1737_p12 }
  0x72   : > { %p1740_p4 = pnand %p1739_p2, %p1733_p7 }
  0x74   : > { %1743 = shalt.err (!%p1740_p4)
}
  0x75   : > { %1553 = dma.hbm_to_vmem [thread:$0]  (!%p2047_p11), %s2045_s18, 64, %s2051_s23, %s320_s22  }
  0x76   : > { %p2307_p0 = scmp.ne.s32.totalorder %s2301_s17, 0 }
  0x77   : > { %s2081_s9 = sand.u32 (!%p2307_p0), 1, %s1810_s10   ;;  %p2308_p9 = scmp.ne.s32.totalorder (!%p2307_p0), %s2298_s15, 0 }
  0x78   : > { %339 = sbr.rel (%p2307_p0) target bundleno = 2741 (0xab5), region = 56  ;;  %s1358_s30 = sshll.u32 (!%p2307_p0), %s2081_s9, 2 }
  0x79   : > { %s342_s29 = scalar_lea.sflag (!%p2307_p0), [#allocation3], %s2081_s9  ;;  %s345_s24 = scalar_lea.vmem (!%p2307_p0), [#allocation2], %s1358_s30 }
  0x7f   : > { %1789 = dma.done.wait (%p2308_p9), %s342_s29, 64  }
  0x80   : > { %1791 = vsyncadd (%p2308_p9), %s342_s29, 4294967232  ;;  %p2309_p8 = scmp.eq.s32.totalorder %s1903_s13, 0 }
  0x82   : > { %1793 = dma.done.wait (%p2309_p8), [#allocation6], 512   ;;  %p2310_p11 = pmov %p2309_p8 }
  0x83   : > { %p2311_p13 = pmov %p2309_p8 }
  0x84   : > { %1795 = vsyncadd (%p2310_p11), [#allocation6], 4294966784 }
  0x85   : > { %1797 = dma.done.wait (%p2311_p13), [#allocation9], 256   ;;  %p2312_p6 = pmov %p2309_p8 }
  0x86   : > { %v1826_v0 = vmov 0.0   ;;  %vm1827_vm0 = vmmov 0   ;;  %v1608_v1 = vld [vmem:[#allocation7] sm:$0xff]   ;;  %v1609_v2 = vld [vmem:[#allocation5] sm:$0xff]   ;;  %v1610_v3 = vld [vmem:[#allocation7 + $0x8] sm:$0xff]   ;;  %vm417_vm1 = vcmask 261120  }
  0x87   : > { %1799 = vsyncadd (%p2312_p6), [#allocation9], 4294967040  ;;  %1436 = vmatprep.subr.bf16.mxu1 %v1826_v0  ;;  %1428 = vmatprep.subr.bf16.mxu0 %v1826_v0  ;;  %v1611_v4 = vld [vmem:[#allocation5 + $0x8] sm:$0xff]   ;;  %v393_v5 = vld [vmem:[%s345_s24] sm:$0xf]  ;;  %vm591_vm2 = vcmask 64512  }
  0x88   : > { %1440 = vmatprep.mubr.msk.bf16.mxu1 %vm1827_vm0, %v1826_v0  ;;  %1432 = vmatprep.mubr.msk.bf16.mxu0 %vm1827_vm0, %v1826_v0  ;;  %v1367_v6 = vld [vmem:[%s2285_s5] ss:$0 sm:$0xff]  ;;  %s1828_s19 = smov 120   ;;  %v1612_v22 = vld [vmem:[#allocation8] sm:$0xff]   ;;  %s1829_s28 = smov 112   ;;  %vm653_vm3 = vcmask 1043456  }
  0x89   : > { %1437 = vmatpush3.bf16.msra.mxu1 %v1608_v1  ;;  %1429 = vmatpush3.bf16.msra.mxu0 %v1609_v2  ;;  %v1363_v7 = vld [vmem:[%s2284_s4] ss:$0 sm:$0xff]  ;;  %v1379_v59 = vld [vmem:[%s2287_s7 + $0x4] sm:$0xf]  ;;  %s1830_s29 = smov 104   ;;  %s1362_s23 = sshll.u32 %s2081_s9, 3 }
  0x8a   : > { %1438 = vmatprep.subr.bf16.mxu1 %v1826_v0  ;;  %1430 = vmatprep.subr.bf16.mxu0 %v1826_v0  ;;  %v1613_v23 = vld [vmem:[#allocation8 + $0x8] sm:$0xff]   ;;  %v819_v60 = vsel %vm653_vm3, %v1379_v59, 0  ;;  %s1392_s25 = sshll.u32 %s1903_s13, 7  ;;  %s2313_s30 = sld [smem:[#allocation17_spill]] }
  0x8b   : > { %v1371_v46 = vld [vmem:[%s2286_s6] ss:$0 sm:$0xff]  ;;  %s1237_s15 = scalar_lea.sflag [#allocation4], %s2081_s9  ;;  %s1831_s17 = smov [#allocation10]  }
  0x8c   : > { %v698_v2 = vld [vmem:[%s2287_s7] sm:$0xf]  ;;  %s1748_s18 = sshll.u32 %s1831_s17, 4  ;;  %s1749_s18 = int_to_ptr.vmem [resolvable:$false] %s1748_s18 }
  0x8d   : > { %1439 = vmatpush3.bf16.msra.mxu1 %v1610_v3  ;;  %1431 = vmatpush3.bf16.msra.mxu0 %v1611_v4 }
  0x8e   : > { %1452 = vmatprep.subr.bf16.mxu1 %v1826_v0  ;;  %1444 = vmatprep.subr.bf16.mxu0 %v1826_v0 }
  0x90   : > { %1441 = vmatmul.mubr.msk.bf16.vlgmr.msra.gmra.mrb[0].mxu1 %vm417_vm1, %v393_v5  ;;  %1433 = vmatmul.mubr.msk.bf16.vlgmr.msra.gmra.mrb[0].mxu0 %vm417_vm1, %v393_v5  ;;  %s2236_s24 = scalar_lea.hbm %s2313_s30, %s1392_s25 }
  0x91   : > { %1454 = vmatprep.mubr.msk.bf16.mxu1 %vm1827_vm0, %v1826_v0  ;;  %1448 = vmatprep.mubr.msk.bf16.mxu0 %vm1827_vm0, %v1826_v0 }
  0x92   : > { %1445 = vmatpush3.bf16.msra.mxu0 %v1612_v22 }
  0x93   : > { %1446 = vmatprep.subr.bf16.mxu0 %v1826_v0 }
  0x96   : > { %1447 = vmatpush3.bf16.msra.mxu0 %v1613_v23 }
  0x97   : > { %1458 = vmatprep.subr.bf16.mxu0 %v1826_v0 }
  0x99   : > { %1449 = vmatmul.mubr.msk.bf16.vlgmr.msra.gmra.mrb[4].mxu0 %vm417_vm1, %v393_v5  ;;  %v865_v5 = vsel %vm653_vm3, %v698_v2, 0 }
  0x9a   : > { %1460 = vmatprep.mubr.msk.bf16.mxu0 %vm1827_vm0, %v1826_v0 }
 0x163   : > { %v519_v8 = vpop.f32.mrb[0].mxu1  ;;  %v455_v11 = vpop.f32.mrb[0].mxu0 }
 0x164   : > { %v520_v9 = vadd.f32 %v1367_v6, %v519_v8  ;;  %v1442_v10 = vpop.f32.mrb[1].mxu1  ;;  %v456_v13 = vadd.f32 %v1363_v7, %v455_v11  ;;  %v1434_v14 = vpop.f32.mrb[1].mxu0 }
 0x165   : > { %v522_v12 = vpop.f32.mrb[2].mxu1  ;;  %v458_v17 = vpop.f32.mrb[2].mxu0 }
 0x166   : > { %v2119_v15 = vpack.c.bf16 %v520_v9, %v520_v9  ;;  %v1443_v16 = vpop.f32.mrb[3].mxu1  ;;  %v461_v18 = vmul.f32 0.35355338, %v456_v13  ;;  %v1435_v19 = vpop.f32.mrb[3].mxu0 }
 0x168   : > { %703 = vrot.lane.b32.xlu0 %v2119_v15, %s1828_s19  ;;  %v596_v20 = vsel %vm591_vm2, %v2119_v15, 0  ;;  %v2125_v21 = vpack.c.bf16 %v461_v18, %v461_v18 }
 0x169   : > { %1453 = vmatpush3.bf16.xpose.msra.mxu1 %v596_v20 }
 0x16a   : > { %1464 = vmatprep.subr.bf16.mxu1 %v1826_v0 }
 0x16c   : > { %700 = vrot.lane.b32.xlu0 %v2125_v21, %s1828_s19  ;;  %v582_v40 = vpop.f32.mrb[4].mxu0 }
 0x16d   : > { %v1450_v41 = vpop.f32.mrb[5].mxu0  ;;  %v583_v47 = vadd.f32 %v1371_v46, %v582_v40 }
 0x16e   : > { %v585_v42 = vpop.f32.mrb[6].mxu0 }
 0x16f   : > { %v1451_v43 = vpop.f32.mrb[7].mxu0  ;;  %v2150_v48 = vpack.c.bf16 %v583_v47, %v583_v47 }
 0x170   : > { %1455 = vmatmul.mubr.msk.bf16.vlgmr.msra.gmra.mrb[4].mxu1 %vm591_vm2, %v2125_v21 }
 0x171   : > { %1466 = vmatprep.mubr.msk.bf16.mxu1 %vm1827_vm0, %v1826_v0  ;;  %v655_v49 = vsel %vm653_vm3, %v2150_v48, 0 }
 0x172   : > { %1459 = vmatpush3.bf16.msra.mxu0 %v655_v49 }
 0x173   : > { %1470 = vmatprep.subr.bf16.mxu0 %v1826_v0 }
 0x1da   : > { %v704_v24 = vpop.permute.xlu0 %703 }
 0x1db   : > { %v709_v25 = vsel %vm591_vm2, %v704_v24, 0 }
 0x1dc   : > { %1465 = vmatpush3.bf16.xpose.msra.mxu1 %v709_v25 }
 0x1dd   : > { %1476 = vmatprep.subr.bf16.mxu1 %v1826_v0 }
 0x1de   : > { %v701_v26 = vpop.permute.xlu0 %700 }
 0x1e3   : > { %1467 = vmatmul.mubr.msk.bf16.vlgmr.msra.gmra.mrb[8].mxu1 %vm591_vm2, %v701_v26 }
 0x1e4   : > { %1478 = vmatprep.mubr.msk.bf16.mxu1 %vm1827_vm0, %v1826_v0  ;;  %1477 = vmatpush3.bf16.msra.mxu1 %v819_v60 }
 0x1e5   : > { %1488 = vmatprep.subr.bf16.mxu1 %v1826_v0 }
 0x243   : > { %v632_v27 = vpop.f32.mrb[4].mxu1 }
 0x244   : > { %v1456_v28 = vpop.f32.mrb[5].mxu1  ;;  %v638_v29 = vsel %vm591_vm2, %v632_v27, -inf }
 0x245   : > { %639 = vmax.xlane.f32.xlu1 %v638_v29  ;;  %v635_v30 = vpop.f32.mrb[6].mxu1 }
 0x246   : > { %v1457_v31 = vpop.f32.mrb[7].mxu1 }
 0x2b6   : > { %v745_v32 = vpop.f32.mrb[8].mxu1 }
 0x2b7   : > { %v1468_v33 = vpop.f32.mrb[9].mxu1  ;;  %v751_v34 = vsel %vm591_vm2, %v745_v32, -inf }
 0x2b8   : > { %752 = vmax.xlane.f32.xlu1 %v751_v34  ;;  %v748_v35 = vpop.f32.mrb[10].mxu1 }
 0x2b9   : > { %v1469_v36 = vpop.f32.mrb[11].mxu1 }
 0x2d2   : > { %v640_v37 = vpop.xlane.xlu1 %639 }
 0x2d3   : > { %v641_v38 = vsub.f32 %v632_v27, %v640_v37 }
 0x2d5   : > { %v642_v39 = vmul.f32 1.442695, %v641_v38 }
 0x2d7   : > { %1614 = vpow2.f32 %v642_v39 }
 0x2e1   : > { %v1615_v44 = vpop.eup %1614 }
 0x2e2   : > { %v644_v45 = vsel %vm591_vm2, %v1615_v44, 0.0 }
 0x2e3   : > { %645 = vadd.xlane.f32.xlu0 %v644_v45 }
 0x2f9   : > { %969 = vrot.lane.b32.xlu0 %v2150_v48, %s1829_s28 }
 0x345   : > { %v753_v50 = vpop.xlane.xlu1 %752 }
 0x346   : > { %v754_v51 = vsub.f32 %v745_v32, %v753_v50 }
 0x348   : > { %v755_v52 = vmul.f32 1.442695, %v754_v51 }
 0x34a   : > { %1616 = vpow2.f32 %v755_v52 }
 0x354   : > { %v1617_v53 = vpop.eup %1616 }
 0x355   : > { %v757_v54 = vsel %vm591_vm2, %v1617_v53, 0.0 }
 0x356   : > { %758 = vadd.xlane.f32.xlu1 %v757_v54 }
 0x367   : > { %764 = vrot.lane.b32.xlu1 %v2150_v48, %s1828_s19 }
 0x36b   : > { %909 = vrot.lane.b32.xlu1 %v2119_v15, %s1829_s28 }
 0x36f   : > { %907 = vrot.lane.b32.xlu1 %v2125_v21, %s1829_s28  ;;  %s391_s28 = scalar_lea.vmem [#allocation10], %s1362_s23  ;;  %s1750_s23 = scalar_lea.vmem %s1749_s18, 256 }
 0x370   : > { %v646_v55 = vpop.xlane.xlu0 %645  ;;  %s1250_s26 = sshll.u32 %s391_s28, 4  ;;  %s2238_s26 = int_to_ptr.vmem [resolvable:$true] %s1250_s26 }
 0x371   : > { %1618 = vrcp.f32 %v646_v55  ;;  %s1744_s13 = scalar_lea.vmem %s2238_s26, 128  ;;  %p1751_p12 = scmp.lt.s32.totalorder %s2238_s26, %s1749_s18 }
 0x372   : > { %p1745_p10 = scmp.ne.s32.totalorder %s2238_s26, %s1744_s13  ;;  %p1752_p1 = scmp.lt.s32.totalorder %s1750_s23, %s1744_s13 }
 0x374   : > { %v970_v6 = vpop.permute.xlu0 %969  ;;  %p1746_p3 = pnand %p1745_p10, %p2036_p5  ;;  %p1753_p2 = por %p1752_p1, %p1751_p12 }
 0x375   : > { %v975_v11 = vsel %vm653_vm3, %v970_v6, 0 }
 0x376   : > { %p1747_p7 = pneg %p1746_p3 }
 0x378   : > { %p1754_p4 = pnand %p1753_p2, %p1747_p7 }
 0x37b   : > { %v1619_v56 = vpop.eup %1618 }
 0x37c   : > { %v648_v57 = vmul.f32 %v1619_v56, %v1615_v44 }
 0x37e   : > { %v649_v58 = vpack.c.bf16 %v648_v57, %v648_v57 }
 0x380   : > { %1461 = vmatmul.mubr.msk.bf16.vlgmr.msra.gmra.mrb[8].mxu0 %vm591_vm2, %v649_v58 }
 0x381   : > { %1472 = vmatprep.mubr.msk.bf16.mxu0 %vm1827_vm0, %v1826_v0 }
 0x3e3   : > { %v759_v61 = vpop.xlane.xlu1 %758 }
 0x3e4   : > { %1620 = vrcp.f32 %v759_v61 }
 0x3e7   : > { %v765_v62 = vpop.permute.xlu1 %764 }
 0x3e8   : > { %v770_v63 = vsel %vm653_vm3, %v765_v62, 0 }
 0x3e9   : > { %1471 = vmatpush3.bf16.msra.mxu0 %v770_v63 }
 0x3ea   : > { %1482 = vmatprep.subr.bf16.mxu0 %v1826_v0 }
 0x3eb   : > { %v910_v13 = vpop.permute.xlu1 %909 }
 0x3ec   : > { %v915_v19 = vsel %vm591_vm2, %v910_v13, 0 }
 0x3ee   : > { %v1621_v1 = vpop.eup %1620 }
 0x3ef   : > { %v761_v3 = vmul.f32 %v1621_v1, %v1617_v53  ;;  %v908_v22 = vpop.permute.xlu1 %907 }
 0x3f1   : > { %v762_v4 = vpack.c.bf16 %v761_v3, %v761_v3 }
 0x3f3   : > { %1473 = vmatmul.mubr.msk.bf16.vlgmr.msra.gmra.mrb[12].mxu0 %vm591_vm2, %v762_v4 }
 0x3f4   : > { %1483 = vmatpush3.bf16.msra.mxu0 %v865_v5  ;;  %1484 = vmatprep.mubr.msk.bf16.mxu0 %vm1827_vm0, %v1826_v0 }
 0x3f5   : > { %1494 = vmatprep.subr.bf16.mxu0 %v1826_v0 }
 0x453   : > { %v691_v7 = vpop.f32.mrb[8].mxu0 }
 0x454   : > { %v697_v8 = vpack.c.bf16 %v691_v7, %v691_v7  ;;  %v1462_v9 = vpop.f32.mrb[9].mxu0 }
 0x455   : > { %v694_v10 = vpop.f32.mrb[10].mxu0 }
 0x456   : > { %v1463_v12 = vpop.f32.mrb[11].mxu0  ;;  %1485 = vmatmul.mubr.msk.bf16.vlgmr.msra.gmra.mrb[16].mxu0 %vm591_vm2, %v697_v8 }
 0x457   : > { %1495 = vmatpush3.bf16.msra.mxu0 %v975_v11  ;;  %1496 = vmatprep.mubr.msk.bf16.mxu0 %vm1827_vm0, %v1826_v0 }
 0x458   : > { %1506 = vmatprep.subr.bf16.mxu0 %v1826_v0 }
 0x4c6   : > { %v806_v14 = vpop.f32.mrb[12].mxu0 }
 0x4c7   : > { %v812_v16 = vpack.c.bf16 %v806_v14, %v806_v14  ;;  %v1474_v17 = vpop.f32.mrb[13].mxu0 }
 0x4c8   : > { %v809_v18 = vpop.f32.mrb[14].mxu0 }
 0x4c9   : > { %v1475_v20 = vpop.f32.mrb[15].mxu0  ;;  %1479 = vmatmul.mubr.msk.bf16.vlgmr.msra.gmra.mrb[12].mxu1 %vm591_vm2, %v812_v16 }
 0x4ca   : > { %1489 = vmatpush3.bf16.xpose.msra.mxu1 %v915_v19  ;;  %1490 = vmatprep.mubr.msk.bf16.mxu1 %vm1827_vm0, %v1826_v0  ;;  %v1390_v20 = vld [vmem:[%s2288_s8] ss:$0 sm:$0xff] }
 0x4cb   : > { %1500 = vmatprep.subr.bf16.mxu1 %v1826_v0 }
 0x4d1   : > { %1491 = vmatmul.mubr.msk.bf16.vlgmr.msra.gmra.mrb[16].mxu1 %vm591_vm2, %v908_v22 }
 0x4d2   : > { %1502 = vmatprep.mubr.msk.bf16.mxu1 %vm1827_vm0, %v1826_v0 }
 0x529   : > { %v901_v23 = vpop.f32.mrb[16].mxu0 }
 0x52a   : > { %v1486_v24 = vpop.f32.mrb[17].mxu0 }
 0x52b   : > { %v904_v25 = vpop.f32.mrb[18].mxu0 }
 0x52c   : > { %v1487_v26 = vpop.f32.mrb[19].mxu0 }
 0x59c   : > { %v855_v27 = vpop.f32.mrb[12].mxu1 }
 0x59d   : > { %v2192_v28 = vadd.f32 %v901_v23, %v855_v27  ;;  %v1480_v29 = vpop.f32.mrb[13].mxu1 }
 0x59e   : > { %v858_v30 = vpop.f32.mrb[14].mxu1 }
 0x59f   : > { %v1481_v31 = vpop.f32.mrb[15].mxu1 }
 0x5a4   : > { %v951_v32 = vpop.f32.mrb[16].mxu1 }
 0x5a5   : > { %v1492_v33 = vpop.f32.mrb[17].mxu1  ;;  %v957_v34 = vsel %vm591_vm2, %v951_v32, -inf }
 0x5a6   : > { %958 = vmax.xlane.f32.xlu1 %v957_v34  ;;  %v954_v35 = vpop.f32.mrb[18].mxu1 }
 0x5a7   : > { %v1493_v36 = vpop.f32.mrb[19].mxu1 }
 0x633   : > { %v959_v37 = vpop.xlane.xlu1 %958 }
 0x634   : > { %v960_v38 = vsub.f32 %v951_v32, %v959_v37 }
 0x636   : > { %v961_v39 = vmul.f32 1.442695, %v960_v38 }
 0x638   : > { %1622 = vpow2.f32 %v961_v39 }
 0x642   : > { %v1623_v40 = vpop.eup %1622 }
 0x643   : > { %v963_v41 = vsel %vm591_vm2, %v1623_v40, 0.0 }
 0x644   : > { %964 = vadd.xlane.f32.xlu0 %v963_v41 }
 0x65a   : > { %1069 = vrot.lane.b32.xlu0 %v2119_v15, %s1830_s29 }
 0x65e   : > { %1067 = vrot.lane.b32.xlu0 %v2125_v21, %s1830_s29  ;;  %v1384_v21 = vld [vmem:[%s2287_s7 + $0x8] sm:$0xf] }
 0x65f   : > { %v1024_v49 = vsel %vm653_vm3, %v1384_v21, 0 }
 0x660   : > { %1501 = vmatpush3.bf16.msra.mxu1 %v1024_v49 }
 0x661   : > { %1512 = vmatprep.subr.bf16.mxu1 %v1826_v0 }
 0x6d1   : > { %v965_v42 = vpop.xlane.xlu0 %964 }
 0x6d2   : > { %1624 = vrcp.f32 %v965_v42 }
 0x6d5   : > { %v1070_v45 = vpop.permute.xlu0 %1069 }
 0x6d6   : > { %v1075_v47 = vsel %vm591_vm2, %v1070_v45, 0 }
 0x6d9   : > { %v1068_v15 = vpop.permute.xlu0 %1067 }
 0x6dc   : > { %v1625_v43 = vpop.eup %1624 }
 0x6dd   : > { %v967_v44 = vmul.f32 %v1625_v43, %v1623_v40 }
 0x6df   : > { %v968_v46 = vpack.c.bf16 %v967_v44, %v967_v44 }
 0x6e1   : > { %1497 = vmatmul.mubr.msk.bf16.vlgmr.msra.gmra.mrb[20].mxu0 %vm591_vm2, %v968_v46 }
 0x6e2   : > { %1507 = vmatpush3.bf16.xpose.msra.mxu0 %v1075_v47  ;;  %1508 = vmatprep.mubr.msk.bf16.mxu0 %vm1827_vm0, %v1826_v0 }
 0x6e3   : > { %1518 = vmatprep.subr.bf16.mxu0 %v1826_v0 }
 0x6e9   : > { %1509 = vmatmul.mubr.msk.bf16.vlgmr.msra.gmra.mrb[24].mxu0 %vm591_vm2, %v1068_v15 }
 0x6ea   : > { %1520 = vmatprep.mubr.msk.bf16.mxu0 %vm1827_vm0, %v1826_v0 }
 0x7b4   : > { %v1011_v50 = vpop.f32.mrb[20].mxu0 }
 0x7b5   : > { %v1017_v51 = vpack.c.bf16 %v1011_v50, %v1011_v50  ;;  %v1498_v52 = vpop.f32.mrb[21].mxu0 }
 0x7b6   : > { %v1014_v53 = vpop.f32.mrb[22].mxu0 }
 0x7b7   : > { %v1499_v54 = vpop.f32.mrb[23].mxu0  ;;  %1503 = vmatmul.mubr.msk.bf16.vlgmr.msra.gmra.mrb[20].mxu1 %vm591_vm2, %v1017_v51 }
 0x7b8   : > { %1514 = vmatprep.mubr.msk.bf16.mxu1 %vm1827_vm0, %v1826_v0  ;;  %v1388_v0 = vld [vmem:[%s2287_s7 + $0xc] sm:$0xf] }
 0x7b9   : > { %v1184_v2 = vsel %vm653_vm3, %v1388_v0, 0 }
 0x7ba   : > { %1519 = vmatpush3.bf16.msra.mxu0 %v1184_v2 }
 0x7bc   : > { %v1111_v55 = vpop.f32.mrb[24].mxu0 }
 0x7bd   : > { %v1510_v56 = vpop.f32.mrb[25].mxu0  ;;  %v1117_v57 = vsel %vm591_vm2, %v1111_v55, -inf }
 0x7be   : > { %1118 = vmax.xlane.f32.xlu0 %v1117_v57  ;;  %v1114_v58 = vpop.f32.mrb[26].mxu0 }
 0x7bf   : > { %v1511_v59 = vpop.f32.mrb[27].mxu0 }
 0x84b   : > { %v1119_v60 = vpop.xlane.xlu0 %1118 }
 0x84c   : > { %v1120_v61 = vsub.f32 %v1111_v55, %v1119_v60 }
 0x84e   : > { %v1121_v62 = vmul.f32 1.442695, %v1120_v61 }
 0x850   : > { %1626 = vpow2.f32 %v1121_v62 }
 0x85a   : > { %v1627_v63 = vpop.eup %1626 }
 0x85b   : > { %v1123_v1 = vsel %vm591_vm2, %v1627_v63, 0.0 }
 0x85c   : > { %1124 = vadd.xlane.f32.xlu1 %v1123_v1 }
 0x86d   : > { %1129 = vrot.lane.b32.xlu1 %v2150_v48, %s1830_s29  ;;  %s2314_s29 = smov %s2313_s30 }
 0x88a   : > { %v1060_v3 = vpop.f32.mrb[20].mxu1 }
 0x88b   : > { %v1066_v4 = vadd.f32 %v1060_v3, %v2192_v28  ;;  %v1504_v5 = vpop.f32.mrb[21].mxu1 }
 0x88c   : > { %v1063_v6 = vpop.f32.mrb[22].mxu1 }
 0x88d   : > { %v1505_v7 = vpop.f32.mrb[23].mxu1 }
 0x8e9   : > { %v1125_v8 = vpop.xlane.xlu1 %1124 }
 0x8ea   : > { %1628 = vrcp.f32 %v1125_v8 }
 0x8ed   : > { %v1130_v9 = vpop.permute.xlu1 %1129 }
 0x8ee   : > { %v1135_v48 = vsel %vm653_vm3, %v1130_v9, 0 }
 0x8ef   : > { %1513 = vmatpush3.bf16.msra.mxu1 %v1135_v48 }
 0x8f4   : > { %v1629_v10 = vpop.eup %1628 }
 0x8f5   : > { %v1127_v11 = vmul.f32 %v1629_v10, %v1627_v63 }
 0x8f7   : > { %v1128_v12 = vpack.c.bf16 %v1127_v11, %v1127_v11 }
 0x8f9   : > { %1515 = vmatmul.mubr.msk.bf16.vlgmr.msra.gmra.mrb[24].mxu1 %vm591_vm2, %v1128_v12 }
 0x9cc   : > { %v1171_v13 = vpop.f32.mrb[24].mxu1 }
 0x9cd   : > { %v1177_v14 = vpack.c.bf16 %v1171_v13, %v1171_v13  ;;  %v1516_v16 = vpop.f32.mrb[25].mxu1 }
 0x9ce   : > { %v1174_v17 = vpop.f32.mrb[26].mxu1 }
 0x9cf   : > { %v1517_v18 = vpop.f32.mrb[27].mxu1  ;;  %1521 = vmatmul.mubr.msk.bf16.vlgmr.msra.gmra.mrb[28].mxu0 %vm591_vm2, %v1177_v14 }
 0xaa2   : > { %v1220_v19 = vpop.f32.mrb[28].mxu0 }
 0xaa3   : > { %v1226_v22 = vadd.f32 %v1220_v19, %v1066_v4  ;;  %v1522_v23 = vpop.f32.mrb[29].mxu0 }
 0xaa4   : > { %v1223_v24 = vpop.f32.mrb[30].mxu0 }
 0xaa5   : > { %v1234_v25 = vadd.f32 %v1390_v20, %v1226_v22  ;;  %v1523_v26 = vpop.f32.mrb[31].mxu0 }
 0xaa7   : > { %1235 = vst [vmem:[%s391_s28] sm:$0xff] %v1234_v25 }
 0xaa8   : > { %1757 = shalt.err (!%p1754_p4)
}
 0xaa9   : > { %s1758_s9 = scalar_lea.hbm %s2236_s24, 128  ;;  %s1762_s25 = scalar_lea.hbm %s2314_s29, 256 }
 0xaaa   : > { %p1759_p0 = scmp.ne.s32.totalorder %s2236_s24, %s1758_s9  ;;  %p1763_p11 = scmp.lt.u32.totalorder %s2236_s24, %s2314_s29 }
 0xaab   : > { %p1764_p13 = scmp.lt.u32.totalorder %s1762_s25, %s1758_s9  ;;  %p1766_p10 = scmp.lt.u32.totalorder %s1758_s9, %s2236_s24 }
 0xaac   : > { %p1760_p9 = pnand %p1759_p0, %p2036_p5 }
 0xaad   : > { %p1765_p6 = por %p1764_p13, %p1763_p11 }
 0xaae   : > { %p1761_p8 = pneg %p1760_p9 }
 0xaaf   : > { %p1767_p3 = por %p1766_p10, %p1765_p6 }
 0xab1   : > { %p1768_p7 = pnand %p1767_p3, %p1761_p8 }
 0xab3   : > { %1771 = shalt.err (!%p1768_p7)
}
 0xab4   : > { %1538 = dma.vmem_to_hbm [thread:$0]  (%p2036_p5), %s2238_s26, 128, %s2236_s24, %s1237_s15  }
 0xab5 PF: > { %s2315_s20 = sld [smem:[#allocation15_spill]]  ;;  %s2316_s30 = sld [smem:[#allocation16_spill]] }
 0xab6   : > { %p2318_p1 = scmp.ge.s32.totalorder %s1818_s12, 2 }
 0xabb   : > { %s1262_s13 = sand.u32 1, %s2315_s20   ;;  %p2317_p12 = scmp.ne.s32.totalorder %s2316_s30, 0 }
 0xabc   : > { %s1263_s17 = scalar_lea.sflag [#allocation4], %s1262_s13 }
 0xabd   : > { %p1555_p2 = pnand %p2318_p1, %p2317_p12 }
 0xabf   : > { %1801 = dma.done.wait (!%p1555_p2), %s1263_s17, 128  }
 0xac0   : > { %1803 = vsyncadd (!%p1555_p2), %s1263_s17, 4294967168  ;;  %p24_p4 = scmp.ge.s32.totalorder %s2022_s14, 4   ;;  %s2319_s30 = smov %s1810_s10 }
 0xac1   : > { %s2320_s10 = smov %s1814_s11  ;;  %s2321_s11 = smov %s2032_s16 }
 0xac2   : > { %s2322_s12 = smov %s2022_s14  ;;  %26 = sbr.rel (!%p24_p4) target bundleno = 9 (0x9), region = 116 }
 0xac9   :  { %1268 = vsyncpa [#allocation3], 1 }
 0xaca   :  { %1270 = vsyncpa [#allocation3 + $0x1], 1 }
 0xacb   :  { %1271 = vsyncpa [#allocation6], 1 }
 0xacc   :  { %1272 = vsyncpa [#allocation9], 1 }
 0xacd   :  { %1273 = vsyncpa [#allocation4], 1 }
 0xace   :  { %1275 = vsyncpa [#allocation4 + $0x1], 1 }

</bundles_post_ra>
